<compile_context>
chip_gen: v6e
topology: v6e:2x2x1
jax: 0.10.0
libtpu: 0.0.40
codegen_flags: <defaults>
</compile_context>

<pallas_src>
import functools
import math

import jax
import jax.numpy as jnp
from jax.experimental import pallas as pl
from jax.experimental.pallas import tpu as pltpu

_SUBLANE = 8
_DEFAULT_BLOCK_B = 1024   # rows per batch tile (multiple of 8)


def _round_up(x, m):
    return ((x + m - 1) // m) * m


# ----------------------------- kernels -------------------------------------

def _td_matmul_kernel(d_ref, wt_ref, b_ref, out_ref, *, precision):
    # MXU matmul in the weights' dtype (bf16 weights -> native bf16 passes),
    # f32 accumulation; bias + exp(-relu) epilogue always in f32 (v5e has no
    # bf16 VPU/EUP path).  `precision` defaults to None; pass
    # jax.lax.Precision.HIGHEST for strict f32 parity at large K.
    d = d_ref[...].astype(wt_ref.dtype)
    z = jnp.dot(d, wt_ref[...], precision=precision,
                preferred_element_type=jnp.float32)
    z = z + b_ref[...].astype(jnp.float32)
    out_ref[...] = jnp.exp(-jnp.maximum(z, 0.0)).astype(out_ref.dtype)


def _td_diag_kernel(d_ref, w_ref, b_ref, out_ref):
    # Elementwise path for diag=True: gamma = exp(-relu(d * diag(W) + b)).
    z = (d_ref[...].astype(jnp.float32) * w_ref[...].astype(jnp.float32)
         + b_ref[...].astype(jnp.float32))
    out_ref[...] = jnp.exp(-jnp.maximum(z, 0.0)).astype(out_ref.dtype)


# ------------------------------- glue ---------------------------------------

def prepare_params(W, b, *, diag=False, param_dtype=jnp.float32):
    """One-time transform of PyTorch-layout params into kernel-ready form.

    W: (output_size, input_size)   (F.linear weight layout)
    b: (output_size,)

    Call once per model, not per forward step (the transpose / diagonal
    extraction should not be a per-step HBM pass).  Feature axes are kept at
    their true sizes (no lane padding) — full-dim blocks keep HBM traffic
    minimal for the small feature dims typical of GRU-D.
    """
    out_sz, in_sz = W.shape
    b2 = jnp.asarray(b, jnp.float32).reshape(1, out_sz)   # bias stays f32 (tiny)

    if diag:
        assert in_sz == out_sz, "diag=True requires input_size == output_size"
        w_diag = jnp.diagonal(jnp.asarray(W)).astype(param_dtype).reshape(1, in_sz)
        return dict(diag=True, w=w_diag, b=b2, in_sz=in_sz, out_sz=out_sz)

    wt = jnp.asarray(W).T.astype(param_dtype)             # (in_sz, out_sz)
    return dict(diag=False, w=wt, b=b2, in_sz=in_sz, out_sz=out_sz)


def temporal_decay(d, params, *, block_b=_DEFAULT_BLOCK_B, out_dtype=None,
                   precision=None):
    """Pallas forward of TemporalDecay.

    d: (B, input_size), any float dtype (kept native in HBM; compute is f32)
    params: output of prepare_params()
    returns gamma: (B, output_size) in out_dtype (default: d.dtype)
    """
    B, in_sz = d.shape
    assert in_sz == params["in_sz"]
    out_sz = params["out_sz"]
    if out_dtype is None:
        out_dtype = d.dtype

    # Batch tile: multiple of 8, capped at block_b, and no larger than
    # ceil(B/2) (rounded up to 8) so the "parallel" grid axis has >= 2 blocks
    # whenever B > 8 -> both v7x TensorCores get work.  The last grid block
    # may be partial: Pallas masks its out-of-bounds stores.
    tb = max(_SUBLANE, min(block_b, _round_up(pl.cdiv(B, 2), _SUBLANE)))
    grid = (pl.cdiv(B, tb),)

    # Resident operands (constant index_map): single-buffered, never re-DMA'd.
    resident = pl.Buffered(1)
    if params["diag"]:
        kernel = _td_diag_kernel
        w_spec = pl.BlockSpec((1, in_sz), lambda i: (0, 0),
                              pipeline_mode=resident)
    else:
        kernel = functools.partial(_td_matmul_kernel, precision=precision)
        w_spec = pl.BlockSpec((in_sz, out_sz), lambda i: (0, 0),
                              pipeline_mode=resident)
    b_spec = pl.BlockSpec((1, out_sz), lambda i: (0, 0), pipeline_mode=resident)

    return pl.pallas_call(
        kernel,
        out_shape=jax.ShapeDtypeStruct((B, out_sz), out_dtype),
        grid=grid,
        in_specs=[
            pl.BlockSpec((tb, in_sz), lambda i: (i, 0)),   # d: tiled over batch
            w_spec,                                        # weight: resident
            b_spec,                                        # bias: resident
        ],
        out_specs=pl.BlockSpec((tb, out_sz), lambda i: (i, 0)),
        compiler_params=pltpu.CompilerParams(
            dimension_semantics=("parallel",)),            # megacore split on v7x
    )(d, params["w"], params["b"])


def init_params(key, input_size, output_size):
    """Matches reset_parameters(): U(-stdv, stdv), stdv = 1/sqrt(output_size)."""
    stdv = 1.0 / math.sqrt(output_size)
    kw, kb = jax.random.split(key)
    W = jax.random.uniform(kw, (output_size, input_size), jnp.float32, -stdv, stdv)
    b = jax.random.uniform(kb, (output_size,), jnp.float32, -stdv, stdv)
    return W, b


# ------------------------------- demo ----------------------------------------

if __name__ == "__main__":
    key = jax.random.PRNGKey(0)
    k_d, k_p1, k_p2 = jax.random.split(key, 3)

    batch, input_size = 8, 32
    output_size = 40          # non-square: exercises the masked-vst lane tail

    def snap_bf16(x):
        # Snap demo values to the bf16 grid so the parity check is independent
        # of whether the f32 matmul runs at full or reduced (bf16-pass) MXU
        # precision on a given generation.
        return x.astype(jnp.bfloat16).astype(jnp.float32)

    d = snap_bf16(jax.random.uniform(k_d, (batch, input_size), jnp.float32, 0.0, 5.0))

    # --- non-diag path (rectangular weight, MXU kernel) ---
    W1, b1 = init_params(k_p1, input_size, output_size)
    W1, b1 = snap_bf16(W1), snap_bf16(b1)
    p1 = prepare_params(W1, b1, diag=False)
    gamma = jax.block_until_ready(temporal_decay(d, p1))

    # --- diag path (square weight, elementwise VPU kernel) ---
    W2, b2 = init_params(k_p2, input_size, input_size)
    W2, b2 = snap_bf16(W2), snap_bf16(b2)
    p2 = prepare_params(W2, b2, diag=True)
    gamma_diag = jax.block_until_ready(temporal_decay(d, p2))

    # --- ragged batch: not a multiple of the batch tile, exercises the
    #     masked partial last grid block (no wrapper-side padding). ---
    batch2 = 12
    d2 = snap_bf16(jax.random.uniform(jax.random.PRNGKey(1),
                                      (batch2, input_size), jnp.float32, 0.0, 5.0))
    gamma2 = jax.block_until_ready(temporal_decay(d2, p1))

    # --- plain-JAX references (PyTorch semantics) ---
    ref = jnp.exp(-jnp.maximum(d @ W1.T + b1, 0.0))
    ref_diag = jnp.exp(-jnp.maximum(d @ (W2 * jnp.eye(input_size)).T + b2, 0.0))
    ref2 = jnp.exp(-jnp.maximum(d2 @ W1.T + b1, 0.0))

    assert gamma.shape == (batch, output_size)
    assert gamma_diag.shape == (batch, input_size)
    assert gamma2.shape == (batch2, output_size)
    assert jnp.allclose(gamma, ref, atol=2e-5), "diag=False mismatch"
    assert jnp.allclose(gamma_diag, ref_diag, atol=2e-5), "diag=True mismatch"
    assert jnp.allclose(gamma2, ref2, atol=2e-5), "ragged-batch mismatch"

    print("KERNEL_OK")
</pallas_src>

<mosaic_0001>
module attributes {stable_mosaic.version = 11 : i64} {
  func.func @_td_matmul_kernel(%arg0: i32, %arg1: memref<8x32xf32, #tpu.memory_space<vmem>>, %arg2: memref<32x40xf32, #tpu.memory_space<vmem>>, %arg3: memref<1x40xf32, #tpu.memory_space<vmem>>, %arg4: memref<8x40xf32, #tpu.memory_space<vmem>>) attributes {dimension_semantics = [#tpu.dimension_semantics<parallel>], iteration_bounds = array<i64: 1>, scalar_prefetch = 0 : i64, scratch_operands = 0 : i64, tpu.core_type = #tpu.core_type<tc>, window_params = [{transform_indices = @transform_0, window_bounds = array<i64: 8, 32>}, {pipeline_mode = #tpu.pipeline_mode<synchronous>, transform_indices = @transform_1, window_bounds = array<i64: 32, 40>}, {pipeline_mode = #tpu.pipeline_mode<synchronous>, transform_indices = @transform_2, window_bounds = array<i64: 1, 40>}, {transform_indices = @transform_3, window_bounds = array<i64: 8, 40>}]} {
    %c0 = arith.constant 0 : index
    %c0_0 = arith.constant 0 : index
    %0 = vector.load %arg1[%c0, %c0_0] : memref<8x32xf32, #tpu.memory_space<vmem>>, vector<8x32xf32>
    %c0_1 = arith.constant 0 : index
    %c0_2 = arith.constant 0 : index
    %1 = vector.load %arg2[%c0_1, %c0_2] : memref<32x40xf32, #tpu.memory_space<vmem>>, vector<32x40xf32>
    %cst = arith.constant dense<0.000000e+00> : vector<8x40xf32>
    %2 = tpu.matmul %0, %1, %cst {dimension_numbers = #tpu.dot_dimension_numbers<[1], [0], [0], [1], [0, 0, 1, 1], [], []>} : vector<8x32xf32>, vector<32x40xf32>, vector<8x40xf32> -> vector<8x40xf32>
    %c0_3 = arith.constant 0 : index
    %c0_4 = arith.constant 0 : index
    %3 = vector.load %arg3[%c0_3, %c0_4] : memref<1x40xf32, #tpu.memory_space<vmem>>, vector<1x40xf32>
    %4 = vector.broadcast %3 : vector<1x40xf32> to vector<8x40xf32>
    %5 = arith.addf %2, %4 : vector<8x40xf32>
    %cst_5 = arith.constant 0.000000e+00 : f32
    %6 = vector.broadcast %cst_5 : f32 to vector<8x40xf32>
    %7 = arith.maximumf %5, %6 : vector<8x40xf32>
    %cst_6 = arith.constant 0.000000e+00 : f32
    %8 = vector.broadcast %cst_6 : f32 to vector<8x40xf32>
    %9 = arith.subf %8, %7 : vector<8x40xf32>
    %10 = math.exp %9 : vector<8x40xf32>
    %c0_7 = arith.constant 0 : index
    %c0_8 = arith.constant 0 : index
    %11 = vector.load %arg4[%c0_7, %c0_8] : memref<8x40xf32, #tpu.memory_space<vmem>>, vector<8x40xf32>
    tpu.vector_store %arg4[%c0_7, %c0_8], %10 {strides = array<i32>} : memref<8x40xf32, #tpu.memory_space<vmem>>, vector<8x40xf32>,
    return
  }
  func.func @transform_0(%arg0: i32) -> (i32, i32) {
    %c0_i32 = arith.constant 0 : i32
    %c0_i32_0 = arith.constant 0 : i32
    return %arg0, %c0_i32 : i32, i32
  }
  func.func @transform_1(%arg0: i32) -> (i32, i32) {
    %c0_i32 = arith.constant 0 : i32
    %c0_i32_0 = arith.constant 0 : i32
    %c0_i32_1 = arith.constant 0 : i32
    return %c0_i32, %c0_i32_0 : i32, i32
  }
  func.func @transform_2(%arg0: i32) -> (i32, i32) {
    %c0_i32 = arith.constant 0 : i32
    %c0_i32_0 = arith.constant 0 : i32
    %c0_i32_1 = arith.constant 0 : i32
    return %c0_i32, %c0_i32_0 : i32, i32
  }
  func.func @transform_3(%arg0: i32) -> (i32, i32) {
    %c0_i32 = arith.constant 0 : i32
    %c0_i32_0 = arith.constant 0 : i32
    return %arg0, %c0_i32 : i32, i32
  }
}

</mosaic_0001>

<bundles_post_ra>
// kernel: tpu_custom_call.1
= control target key start
LH: loop header
LB: loop body
LE: loop exit
PB: predicated region body
PF: predicated region fallthrough
CT: control target
= control target key end

     0   :  { %8 = vsyncpa [#allocation3], 0  ;;  %s281_s0 = inlined_call_operand.hbm [shape: f32[8,32], index: 0, kind: input, shape index: {}]   ;;  %s282_s1 = inlined_call_operand.hbm [shape: f32[32,40], index: 1, kind: input, shape index: {}]   ;;  %s283_s2 = inlined_call_operand.vmem [shape: f32[1,40], index: 2, kind: input, shape index: {}]   ;;  %s284_s3 = inlined_call_operand.hbm [shape: f32[8,40], index: 3, kind: output, shape index: {}]  }
   0x1   :  { %9 = vsyncpa [#allocation6], 0 }
   0x2   :  { %10 = vsyncpa [#allocation4], 0  ;;  %s242_s12 = smov [#allocation2]   ;;  %s243_s14 = smov [#allocation5]  }
   0x3   :  { %s17_s13 = sshll.u32 %s242_s12, 4  ;;  %s26_s15 = sshll.u32 %s243_s14, 4  ;;  %s18_s13 = int_to_ptr.vmem [resolvable:$true] %s17_s13  ;;  %s27_s15 = int_to_ptr.vmem [resolvable:$true] %s26_s15 }
   0x4   :  { %s184_s16 = scalar_lea.vmem %s18_s13, 128  ;;  %p189_p1 = scmp.lt.s32.totalorder %s18_s13, %s18_s13 }
   0x5   :  { %p185_p0 = scmp.ne.s32.totalorder %s18_s13, %s184_s16  ;;  %p190_p2 = scmp.lt.s32.totalorder %s184_s16, %s184_s16 }
   0x7   :  { %p191_p3 = por %p190_p2, %p189_p1 }
   0x9   :  { %p192_p4 = pnand %p191_p3, %p185_p0 }
   0xb   :  { %195 = shalt.err (!%p192_p4)
}
   0xc   :  { %20 = dma.hbm_to_vmem [thread:$0]  %s281_s0, 128, %s18_s13, [#allocation3]  }
   0xd   :  { %s204_s19 = scalar_lea.vmem %s27_s15, 512  ;;  %p209_p6 = scmp.lt.s32.totalorder %s27_s15, %s27_s15 }
   0xe   :  { %p205_p5 = scmp.ne.s32.totalorder %s27_s15, %s204_s19  ;;  %p210_p7 = scmp.lt.s32.totalorder %s204_s19, %s204_s19 }
  0x10   :  { %p211_p8 = por %p210_p7, %p209_p6 }
  0x12   :  { %p212_p9 = pnand %p211_p8, %p205_p5 }
  0x14   :  { %215 = shalt.err (!%p212_p9)
}
  0x15   :  { %s244_s20 = smov 128   ;;  %s245_s21 = smov 8  }
  0x16   :  { %32 = dma.hbm_to_vmem [thread:$0]  %s282_s1, 512, %s27_s15, [#allocation6], %s244_s20, %s244_s20, %s245_s21  }
  0x17   :  { %236 = dma.done.wait [#allocation3], 128  }
  0x18   :  { %237 = vsyncadd [#allocation3], 4294967168 }
  0x19   :  { %238 = dma.done.wait [#allocation6], 512  }
  0x1a   :  { %239 = vsyncadd [#allocation6], 4294966784  ;;  %v246_v0 = vmov 0.0   ;;  %vm247_vm0 = vmmov 0   ;;  %v45_v1 = vld [vmem:[#allocation5 + $0x18] sm:$0xff]  ;;  %v44_v2 = vld [vmem:[#allocation5 + $0x10] sm:$0xff] }
  0x1b   :  { %156 = vmatprep.subr.mxu0 %v246_v0  ;;  %164 = vmatprep.mubr.msk.f32.mxu0 %vm247_vm0, %v246_v0  ;;  %v43_v3 = vld [vmem:[#allocation5 + $0x8] sm:$0xff]  ;;  %v42_v4 = vld [vmem:[#allocation5] sm:$0xff]  ;;  %v41_v5 = vld [vmem:[#allocation2] sm:$0xff]  ;;  %vm53_vm1 = vcmask 261120   ;;  %s248_s24 = smov [#allocation7]   ;;  %vm131_vm2 = vcmask 326656  }
  0x1c   :  { %157 = vmatpush3.msra.mxu0 %v45_v1  ;;  %v149_v6 = vld [vmem:[%s283_s2] ss:$0 sm:$0xff]  ;;  %s139_s25 = sshll.u32 %s248_s24, 4  ;;  %s140_s25 = int_to_ptr.vmem [resolvable:$true] %s139_s25 }
  0x1d   :  { %158 = vmatprep.subr.mxu0 %v246_v0  ;;  %s216_s26 = scalar_lea.vmem %s140_s25, 128  ;;  %p221_p11 = scmp.lt.s32.totalorder %s140_s25, %s140_s25 }
  0x1e   :  { %159 = vmatpush3.msra.mxu0 %v44_v2  ;;  %p217_p10 = scmp.ne.s32.totalorder %s140_s25, %s216_s26  ;;  %p222_p12 = scmp.lt.s32.totalorder %s216_s26, %s216_s26 }
  0x1f   :  { %160 = vmatprep.subr.mxu0 %v246_v0 }
  0x20   :  { %161 = vmatpush3.msra.mxu0 %v43_v3  ;;  %p223_p13 = por %p222_p12, %p221_p11 }
  0x21   :  { %162 = vmatprep.subr.mxu0 %v246_v0 }
  0x22   :  { %163 = vmatpush3.msra.mxu0 %v42_v4  ;;  %p224_p0 = pnand %p223_p13, %p217_p10 }
  0x23   :  { %165 = vmatmul.mubr.msk.f32.vlgmr.msra.gmra.mxu0 %vm53_vm1, %v41_v5 }
  0xe3   :  { %v123_v7 = vpop.f32.mrf.mxu0 }
  0xe4   :  { %v124_v8 = vadd.f32 %v149_v6, %v123_v7 }
  0xe5   :  { %v166_v9 = vpop.f32.mrf.mxu0 }
  0xe6   :  { %v127_v10 = vmax.f32 %v124_v8, 0.0 }
  0xe8   :  { %v128_v11 = vsub.f32 0.0, %v127_v10 }
  0xea   :  { %v129_v12 = vmul.f32 1.442695, %v128_v11 }
  0xec   :  { %174 = vpow2.f32 %v129_v12 }
  0xf9   :  { %v175_v13 = vpop.eup %174 }
  0xfa   :  { %132 = vst.msk [vmem:[#allocation7] sm:$0xff] %vm131_vm2, %v175_v13 }
  0xfb   :  { %227 = shalt.err (!%p224_p0)
}
  0xfc   :  { %142 = dma.vmem_to_hbm [thread:$0]  %s140_s25, 128, %s284_s3, [#allocation4]  }
  0xfd   :  { %240 = dma.done.wait [#allocation4], 128  }
  0xfe   :  { %241 = vsyncadd [#allocation4], 4294967168 }
  0xff   :  { %146 = vsyncpa [#allocation3], 1 }
 0x100   :  { %147 = vsyncpa [#allocation6], 1 }
 0x101   :  { %148 = vsyncpa [#allocation4], 1 }

</bundles_post_ra>
